<compile_context>
chip_gen: v7x
topology: tpu7x:2x2x1
jax: 0.10.0
libtpu: 0.0.40
codegen_flags: <defaults>
</compile_context>

<pallas_src>
import functools

import jax
import jax.numpy as jnp
from jax.experimental import pallas as pl
from jax.experimental.pallas import tpu as pltpu


IN_FEATURES = 59
HIDDEN = 512
OUT_FEATURES = 64

IN_PAD = 128    # 59 padded up to a lane multiple
OUT_PAD = 128   # 64 padded up to a lane multiple (lane-dense output stores)
NEG_SLOPE = 0.2


def _leaky_relu(x, slope):
    return jnp.where(x > 0, x, slope * x)


def _round_up(x, m):
    return ((x + m - 1) // m) * m


def extractor_kernel(x_ref, w1_ref, b1_ref, w2_ref, b2_ref, o_ref):
    # First linear (bf16 operands, f32 accumulate) + LeakyReLU(0.2) in f32.
    h = jnp.dot(x_ref[...], w1_ref[...], preferred_element_type=jnp.float32)
    h = h + b1_ref[...]                      # (TB, 512) + (1, 512), f32 VPU
    h = _leaky_relu(h, NEG_SLOPE)
    # Second linear (bf16 operands, f32 accumulate) + LeakyReLU(0.2) in f32.
    y = jnp.dot(h.astype(jnp.bfloat16), w2_ref[...],
                preferred_element_type=jnp.float32)
    y = y + b2_ref[...]                      # (TB, 128) + (1, 128), f32 VPU
    o_ref[...] = _leaky_relu(y, NEG_SLOPE).astype(o_ref.dtype)


def prepare_params(w1, b1, w2, b2):
    """Pad/cast params once (outside the per-call path).

    w1: [59, 512], b1: [512], w2: [512, 64], b2: [64]  (x @ W orientation,
    i.e. transposed vs. PyTorch's [out, in] weight layout).
    """
    w1_p = jnp.pad(w1.astype(jnp.bfloat16),
                   ((0, IN_PAD - IN_FEATURES), (0, 0)))          # [128, 512]
    b1_p = b1.astype(jnp.float32).reshape(1, HIDDEN)              # [1, 512]
    w2_p = jnp.pad(w2.astype(jnp.bfloat16),
                   ((0, 0), (0, OUT_PAD - OUT_FEATURES)))         # [512, 128]
    b2_p = jnp.pad(b2.astype(jnp.float32),
                   (0, OUT_PAD - OUT_FEATURES)).reshape(1, OUT_PAD)
    return w1_p, b1_p, w2_p, b2_p


@functools.partial(jax.jit, static_argnames=("block_b",))
def extractor_forward(x, w1_p, b1_p, w2_p, b2_p, *, block_b=256):
    """x: [B, 59] float32; padded params from prepare_params. Returns [B, 64] f32.

    block_b: batch rows per grid step. 256+ keeps the MXU busy (sweep
    256/512/1024 for large B; keep >= 2 grid steps so v7x can split across
    both TensorCores). Small batches are auto-capped to one 8-aligned tile.
    """
    B = x.shape[0]
    # Cap the batch tile for small inputs; keep sublane dim a multiple of 8.
    bb = min(block_b, _round_up(B, 8))
    b_pad = _round_up(B, bb)

    # Pad batch and features (59 -> 128) with zeros; zero lanes/rows are inert.
    x_p = jnp.pad(x.astype(jnp.bfloat16),
                  ((0, b_pad - B), (0, IN_PAD - IN_FEATURES)))

    grid = (b_pad // bb,)

    flops = 2 * b_pad * (IN_PAD * HIDDEN + HIDDEN * OUT_PAD)
    bytes_accessed = (b_pad * IN_PAD * 2            # x (bf16)
                      + b_pad * OUT_PAD * 4         # out (f32)
                      + IN_PAD * HIDDEN * 2         # w1 (bf16)
                      + HIDDEN * OUT_PAD * 2        # w2 (bf16)
                      + (HIDDEN + OUT_PAD) * 4)     # biases (f32)
    cost = pl.CostEstimate(flops=flops, transcendentals=0,
                           bytes_accessed=bytes_accessed)

    out = pl.pallas_call(
        extractor_kernel,
        out_shape=jax.ShapeDtypeStruct((b_pad, OUT_PAD), jnp.float32),
        grid_spec=pltpu.PrefetchScalarGridSpec(
            num_scalar_prefetch=0,
            grid=grid,
            in_specs=[
                pl.BlockSpec((bb, IN_PAD), lambda i: (i, 0)),
                pl.BlockSpec((IN_PAD, HIDDEN), lambda i: (0, 0)),
                pl.BlockSpec((1, HIDDEN), lambda i: (0, 0)),
                pl.BlockSpec((HIDDEN, OUT_PAD), lambda i: (0, 0)),
                pl.BlockSpec((1, OUT_PAD), lambda i: (0, 0)),
            ],
            out_specs=pl.BlockSpec((bb, OUT_PAD), lambda i: (i, 0)),
        ),
        compiler_params=pltpu.CompilerParams(
            dimension_semantics=("parallel",)),
        cost_estimate=cost,
    )(x_p, w1_p, b1_p, w2_p, b2_p)

    return out[:B, :OUT_FEATURES]


def init_params(key):
    """Deterministic init mimicking nn.Linear's uniform(-1/sqrt(fan_in), ...)."""
    k1, k2, k3, k4 = jax.random.split(key, 4)
    bound1 = 1.0 / jnp.sqrt(float(IN_FEATURES))
    bound2 = 1.0 / jnp.sqrt(float(HIDDEN))
    w1 = jax.random.uniform(k1, (IN_FEATURES, HIDDEN), jnp.float32,
                            -bound1, bound1)
    b1 = jax.random.uniform(k2, (HIDDEN,), jnp.float32, -bound1, bound1)
    w2 = jax.random.uniform(k3, (HIDDEN, OUT_FEATURES), jnp.float32,
                            -bound2, bound2)
    b2 = jax.random.uniform(k4, (OUT_FEATURES,), jnp.float32, -bound2, bound2)
    return w1, b1, w2, b2


def reference_forward(x, w1, b1, w2, b2):
    h = x @ w1 + b1
    h = jnp.where(h > 0, h, NEG_SLOPE * h)
    y = h @ w2 + b2
    return jnp.where(y > 0, y, NEG_SLOPE * y)


if __name__ == "__main__":
    key = jax.random.PRNGKey(0)
    kx, kp = jax.random.split(key)
    batch = 8
    x = jax.random.normal(kx, (batch, IN_FEATURES), jnp.float32)
    w1, b1, w2, b2 = init_params(kp)

    # Pad/cast params once (hoisted out of the per-call path).
    w1_p, b1_p, w2_p, b2_p = prepare_params(w1, b1, w2, b2)

    out = extractor_forward(x, w1_p, b1_p, w2_p, b2_p)
    out = jax.block_until_ready(out)

    ref = reference_forward(x, w1, b1, w2, b2)
    assert out.shape == (batch, OUT_FEATURES), out.shape
    # bf16 MXU operands (f32 accumulate) => loosened tolerance vs f32 reference.
    assert jnp.allclose(out, ref, atol=5e-2, rtol=5e-2), \
        float(jnp.max(jnp.abs(out - ref)))

    print("KERNEL_OK")
</pallas_src>

<mosaic_0001>
module attributes {stable_mosaic.version = 11 : i64} {
  func.func @extractor_kernel(%arg0: i32, %arg1: memref<8x128xbf16, #tpu.memory_space<vmem>>, %arg2: memref<128x512xbf16, #tpu.memory_space<vmem>>, %arg3: memref<1x512xf32, #tpu.memory_space<vmem>>, %arg4: memref<512x128xbf16, #tpu.memory_space<vmem>>, %arg5: memref<1x128xf32, #tpu.memory_space<vmem>>, %arg6: memref<8x128xf32, #tpu.memory_space<vmem>>) attributes {dimension_semantics = [#tpu.dimension_semantics<parallel>], iteration_bounds = array<i64: 1>, scalar_prefetch = 0 : i64, scratch_operands = 0 : i64, tpu.core_type = #tpu.core_type<tc>, window_params = [{transform_indices = @transform_0, window_bounds = array<i64: 8, 128>}, {pipeline_mode = #tpu.pipeline_mode<synchronous>, transform_indices = @transform_1, window_bounds = array<i64: 128, 512>}, {pipeline_mode = #tpu.pipeline_mode<synchronous>, transform_indices = @transform_2, window_bounds = array<i64: 1, 512>}, {pipeline_mode = #tpu.pipeline_mode<synchronous>, transform_indices = @transform_3, window_bounds = array<i64: 512, 128>}, {pipeline_mode = #tpu.pipeline_mode<synchronous>, transform_indices = @transform_4, window_bounds = array<i64: 1, 128>}, {transform_indices = @transform_5, window_bounds = array<i64: 8, 128>}]} {
    %c0 = arith.constant 0 : index
    %c0_0 = arith.constant 0 : index
    %0 = vector.load %arg1[%c0, %c0_0] : memref<8x128xbf16, #tpu.memory_space<vmem>>, vector<8x128xbf16>
    %c0_1 = arith.constant 0 : index
    %c0_2 = arith.constant 0 : index
    %1 = vector.load %arg2[%c0_1, %c0_2] : memref<128x512xbf16, #tpu.memory_space<vmem>>, vector<128x512xbf16>
    %cst = arith.constant dense<0.000000e+00> : vector<8x512xf32>
    %2 = tpu.matmul %0, %1, %cst {dimension_numbers = #tpu.dot_dimension_numbers<[1], [0], [0], [1], [0, 0, 1, 1], [], []>} : vector<8x128xbf16>, vector<128x512xbf16>, vector<8x512xf32> -> vector<8x512xf32>
    %c0_3 = arith.constant 0 : index
    %c0_4 = arith.constant 0 : index
    %3 = vector.load %arg3[%c0_3, %c0_4] : memref<1x512xf32, #tpu.memory_space<vmem>>, vector<1x512xf32>
    %4 = vector.broadcast %3 : vector<1x512xf32> to vector<8x512xf32>
    %5 = arith.addf %2, %4 : vector<8x512xf32>
    %cst_5 = arith.constant 0.000000e+00 : f32
    %6 = vector.broadcast %cst_5 : f32 to vector<8x512xf32>
    %7 = arith.cmpf ogt, %5, %6 : vector<8x512xf32>
    %cst_6 = arith.constant 2.000000e-01 : f32
    %8 = vector.broadcast %cst_6 : f32 to vector<8x512xf32>
    %9 = arith.mulf %8, %5 : vector<8x512xf32>
    %10 = arith.select %7, %5, %9 : vector<8x512xi1>, vector<8x512xf32>
    %11 = arith.truncf %10 : vector<8x512xf32> to vector<8x512xbf16>
    %c0_7 = arith.constant 0 : index
    %c0_8 = arith.constant 0 : index
    %12 = vector.load %arg4[%c0_7, %c0_8] : memref<512x128xbf16, #tpu.memory_space<vmem>>, vector<512x128xbf16>
    %cst_9 = arith.constant dense<0.000000e+00> : vector<8x128xf32>
    %13 = tpu.matmul %11, %12, %cst_9 {dimension_numbers = #tpu.dot_dimension_numbers<[1], [0], [0], [1], [0, 0, 1, 1], [], []>} : vector<8x512xbf16>, vector<512x128xbf16>, vector<8x128xf32> -> vector<8x128xf32>
    %c0_10 = arith.constant 0 : index
    %c0_11 = arith.constant 0 : index
    %14 = vector.load %arg5[%c0_10, %c0_11] : memref<1x128xf32, #tpu.memory_space<vmem>>, vector<1x128xf32>
    %15 = vector.broadcast %14 : vector<1x128xf32> to vector<8x128xf32>
    %16 = arith.addf %13, %15 : vector<8x128xf32>
    %cst_12 = arith.constant 0.000000e+00 : f32
    %17 = vector.broadcast %cst_12 : f32 to vector<8x128xf32>
    %18 = arith.cmpf ogt, %16, %17 : vector<8x128xf32>
    %cst_13 = arith.constant 2.000000e-01 : f32
    %19 = vector.broadcast %cst_13 : f32 to vector<8x128xf32>
    %20 = arith.mulf %19, %16 : vector<8x128xf32>
    %21 = arith.select %18, %16, %20 : vector<8x128xi1>, vector<8x128xf32>
    %c0_14 = arith.constant 0 : index
    %c0_15 = arith.constant 0 : index
    %22 = vector.load %arg6[%c0_14, %c0_15] : memref<8x128xf32, #tpu.memory_space<vmem>>, vector<8x128xf32>
    tpu.vector_store %arg6[%c0_14, %c0_15], %21 {strides = array<i32>} : memref<8x128xf32, #tpu.memory_space<vmem>>, vector<8x128xf32>,
    return
  }
  func.func @transform_0(%arg0: i32) -> (i32, i32) {
    %c0_i32 = arith.constant 0 : i32
    %c0_i32_0 = arith.constant 0 : i32
    return %arg0, %c0_i32 : i32, i32
  }
  func.func @transform_1(%arg0: i32) -> (i32, i32) {
    %c0_i32 = arith.constant 0 : i32
    %c0_i32_0 = arith.constant 0 : i32
    %c0_i32_1 = arith.constant 0 : i32
    return %c0_i32, %c0_i32_0 : i32, i32
  }
  func.func @transform_2(%arg0: i32) -> (i32, i32) {
    %c0_i32 = arith.constant 0 : i32
    %c0_i32_0 = arith.constant 0 : i32
    %c0_i32_1 = arith.constant 0 : i32
    return %c0_i32, %c0_i32_0 : i32, i32
  }
  func.func @transform_3(%arg0: i32) -> (i32, i32) {
    %c0_i32 = arith.constant 0 : i32
    %c0_i32_0 = arith.constant 0 : i32
    %c0_i32_1 = arith.constant 0 : i32
    return %c0_i32, %c0_i32_0 : i32, i32
  }
  func.func @transform_4(%arg0: i32) -> (i32, i32) {
    %c0_i32 = arith.constant 0 : i32
    %c0_i32_0 = arith.constant 0 : i32
    %c0_i32_1 = arith.constant 0 : i32
    return %c0_i32, %c0_i32_0 : i32, i32
  }
  func.func @transform_5(%arg0: i32) -> (i32, i32) {
    %c0_i32 = arith.constant 0 : i32
    %c0_i32_0 = arith.constant 0 : i32
    return %arg0, %c0_i32 : i32, i32
  }
}

</mosaic_0001>

<bundles_post_ra>
// kernel: extractor_forward.1
= control target key start
LH: loop header
LB: loop body
LE: loop exit
PB: predicated region body
PF: predicated region fallthrough
CT: control target
= control target key end

     0   :  { %10 = vsyncpa [#allocation3], 0  ;;  %s1078_s0 = inlined_call_operand.vmem [shape: bf16[8,128], index: 0, kind: input, shape index: {}]   ;;  %s1079_s1 = inlined_call_operand.hbm [shape: bf16[128,512], index: 1, kind: input, shape index: {}]   ;;  %s1080_s2 = inlined_call_operand.vmem [shape: f32[1,512], index: 2, kind: input, shape index: {}]   ;;  %s1081_s3 = inlined_call_operand.hbm [shape: bf16[512,128], index: 3, kind: input, shape index: {}]   ;;  %s1082_s4 = inlined_call_operand.vmem [shape: f32[1,128], index: 4, kind: input, shape index: {}]   ;;  %s1083_s5 = inlined_call_operand.hbm [shape: f32[8,128], index: 5, kind: output, shape index: {}]  }
   0x1   :  { %11 = vsyncpa [#allocation6], 0 }
   0x2   :  { %12 = vsyncpa [#allocation4], 0  ;;  %s995_s18 = smov [#allocation2]   ;;  %s923_s22 = scalar_lea.hbm %s1079_s1, 4096 }
   0x3   :  { %s20_s19 = sshll.u32 %s995_s18, 4  ;;  %p924_p0 = scmp.ne.s32.totalorder %s1079_s1, %s923_s22  ;;  %s21_s19 = int_to_ptr.vmem [resolvable:$true] %s20_s19 }
   0x4   :  { %p927_p1 = scmp.lt.u32.totalorder %s923_s22, %s1079_s1 }
   0x6   :  { %p929_p2 = pnand %p927_p1, %p924_p0 }
   0x8   :  { %932 = shalt.err (!%p929_p2)
}
   0x9   :  { %s933_s27 = scalar_lea.vmem %s21_s19, 4096  ;;  %p938_p4 = scmp.lt.s32.totalorder %s21_s19, %s21_s19 }
   0xa   :  { %p934_p3 = scmp.ne.s32.totalorder %s21_s19, %s933_s27  ;;  %p939_p5 = scmp.lt.s32.totalorder %s933_s27, %s933_s27 }
   0xc   :  { %p940_p6 = por %p939_p5, %p938_p4 }
   0xe   :  { %p941_p7 = pnand %p940_p6, %p934_p3 }
  0x10   :  { %944 = shalt.err (!%p941_p7)
}
  0x11   :  { %s996_s28 = smov 256   ;;  %s997_s29 = smov 16  }
  0x12   :  { %26 = dma.hbm_to_vmem [thread:$0]  %s1079_s1, 4096, %s21_s19, [#allocation3], %s996_s28, %s996_s28, %s997_s29  }
  0x13   :  { %s998_s7 = smov [#allocation5]   ;;  %s945_s11 = scalar_lea.hbm %s1081_s3, 4096 }
  0x14   :  { %s34_s8 = sshll.u32 %s998_s7, 4  ;;  %p946_p8 = scmp.ne.s32.totalorder %s1081_s3, %s945_s11  ;;  %s35_s8 = int_to_ptr.vmem [resolvable:$true] %s34_s8 }
  0x15   :  { %p949_p9 = scmp.lt.u32.totalorder %s945_s11, %s1081_s3 }
  0x17   :  { %p951_p10 = pnand %p949_p9, %p946_p8 }
  0x19   :  { %954 = shalt.err (!%p951_p10)
}
  0x1a   :  { %s955_s16 = scalar_lea.vmem %s35_s8, 4096  ;;  %p960_p12 = scmp.lt.s32.totalorder %s35_s8, %s35_s8 }
  0x1b   :  { %p956_p11 = scmp.ne.s32.totalorder %s35_s8, %s955_s16  ;;  %p961_p13 = scmp.lt.s32.totalorder %s955_s16, %s955_s16 }
  0x1d   :  { %p962_p0 = por %p961_p13, %p960_p12 }
  0x1f   :  { %p963_p1 = pnand %p962_p0, %p956_p11 }
  0x21   :  { %966 = shalt.err (!%p963_p1)
}
  0x22   :  { %s999_s1 = smov 64   ;;  %s1000_s17 = smov 4  }
  0x23   :  { %40 = dma.hbm_to_vmem [thread:$0]  %s1081_s3, 4096, %s35_s8, [#allocation6], %s999_s1, %s999_s1, %s1000_s17  }
  0x24   :  { %989 = dma.done.wait [#allocation3], 4096  }
  0x25   :  { %990 = vsyncadd [#allocation3], 4294963200 }
  0x26   :  { %991 = dma.done.wait [#allocation6], 4096  }
  0x27   :  { %992 = vsyncadd [#allocation6], 4294963200  ;;  %v1001_v0 = vmov 0   ;;  %v843_v1 = vld [vmem:[#allocation2 + $0x4] ss:$16 sps:$4 sm:$0xff]   ;;  %v895_v38 = vld [vmem:[#allocation5 + $0x48] sm:$0xff]  }
  0x28   :  { %297 = vmatprep.mubr.bf16.mxu0 %v1001_v0  ;;  %338 = vmatprep.mubr.bf16.mxu1 %v1001_v0  ;;  %v845_v2 = vld [vmem:[#allocation2 + $0xc] ss:$16 sps:$4 sm:$0xff]   ;;  %v847_v3 = vld [vmem:[#allocation2] ss:$16 sps:$4 sm:$0xff]   ;;  %v848_v4 = vld [vmem:[#allocation2 + $0x8] ss:$16 sps:$4 sm:$0xff]  }
  0x29   :  { %265 = vmatprep.subr.bf16.mxu0 %v843_v1  ;;  %306 = vmatprep.subr.bf16.mxu1 %v845_v2  ;;  %v849_v5 = vld [vmem:[#allocation2 + $0x24] ss:$16 sps:$4 sm:$0xff]   ;;  %v851_v6 = vld [vmem:[#allocation2 + $0x2c] ss:$16 sps:$4 sm:$0xff]   ;;  %v853_v7 = vld [vmem:[#allocation2 + $0x20] ss:$16 sps:$4 sm:$0xff]   ;;  %v85_v2 = vlaneseq }
  0x2a   :  { %266 = vmatpush1.bf16.msra.mxu0 %v847_v3  ;;  %307 = vmatpush1.bf16.msra.mxu1 %v848_v4  ;;  %v854_v8 = vld [vmem:[#allocation2 + $0x28] ss:$16 sps:$4 sm:$0xff]   ;;  %v855_v9 = vld [vmem:[#allocation2 + $0x44] ss:$16 sps:$4 sm:$0xff]   ;;  %v857_v10 = vld [vmem:[#allocation2 + $0x4c] ss:$16 sps:$4 sm:$0xff]  }
  0x2b   :  { %267 = vmatprep.subr.bf16.mxu0 %v849_v5  ;;  %308 = vmatprep.subr.bf16.mxu1 %v851_v6  ;;  %v859_v11 = vld [vmem:[#allocation2 + $0x40] ss:$16 sps:$4 sm:$0xff]   ;;  %v860_v12 = vld [vmem:[#allocation2 + $0x48] ss:$16 sps:$4 sm:$0xff]   ;;  %v861_v13 = vld [vmem:[#allocation2 + $0x64] ss:$16 sps:$4 sm:$0xff]  }
  0x2c   :  { %v863_v14 = vld [vmem:[#allocation2 + $0x6c] ss:$16 sps:$4 sm:$0xff]   ;;  %v865_v15 = vld [vmem:[#allocation2 + $0x60] ss:$16 sps:$4 sm:$0xff]   ;;  %v866_v16 = vld [vmem:[#allocation2 + $0x68] ss:$16 sps:$4 sm:$0xff]  }
  0x2d   :  { %v867_v17 = vld [vmem:[#allocation2 + $0x84] ss:$16 sps:$4 sm:$0xff]   ;;  %v869_v18 = vld [vmem:[#allocation2 + $0x8c] ss:$16 sps:$4 sm:$0xff]   ;;  %v871_v19 = vld [vmem:[#allocation2 + $0x80] ss:$16 sps:$4 sm:$0xff]  }
  0x2e   :  { %268 = vmatpush1.bf16.msra.mxu0 %v853_v7  ;;  %309 = vmatpush1.bf16.msra.mxu1 %v854_v8  ;;  %v872_v20 = vld [vmem:[#allocation2 + $0x88] ss:$16 sps:$4 sm:$0xff]   ;;  %v873_v21 = vld [vmem:[#allocation2 + $0xa4] ss:$16 sps:$4 sm:$0xff]   ;;  %v875_v22 = vld [vmem:[#allocation2 + $0xac] ss:$16 sps:$4 sm:$0xff]  }
  0x2f   :  { %269 = vmatprep.subr.bf16.mxu0 %v855_v9  ;;  %310 = vmatprep.subr.bf16.mxu1 %v857_v10  ;;  %v877_v23 = vld [vmem:[#allocation2 + $0xa0] ss:$16 sps:$4 sm:$0xff]   ;;  %v878_v24 = vld [vmem:[#allocation2 + $0xa8] ss:$16 sps:$4 sm:$0xff]   ;;  %v879_v25 = vld [vmem:[#allocation2 + $0xc4] ss:$16 sps:$4 sm:$0xff]  }
  0x30   :  { %v881_v26 = vld [vmem:[#allocation2 + $0xcc] ss:$16 sps:$4 sm:$0xff]   ;;  %v883_v27 = vld [vmem:[#allocation2 + $0xc0] ss:$16 sps:$4 sm:$0xff]   ;;  %v884_v28 = vld [vmem:[#allocation2 + $0xc8] ss:$16 sps:$4 sm:$0xff]  }
  0x31   :  { %v885_v29 = vld [vmem:[#allocation2 + $0xe4] ss:$16 sps:$4 sm:$0xff]   ;;  %v887_v30 = vld [vmem:[#allocation2 + $0xec] ss:$16 sps:$4 sm:$0xff]   ;;  %v889_v31 = vld [vmem:[#allocation2 + $0xe0] ss:$16 sps:$4 sm:$0xff]  }
  0x32   :  { %270 = vmatpush1.bf16.msra.mxu0 %v859_v11  ;;  %311 = vmatpush1.bf16.msra.mxu1 %v860_v12  ;;  %v890_v32 = vld [vmem:[#allocation2 + $0xe8] ss:$16 sps:$4 sm:$0xff]   ;;  %v891_v33 = vld [vmem:[#allocation5 + $0x40] sm:$0xff]   ;;  %v50_v35 = vld [vmem:[%s1078_s0] sm:$0xf]  ;;  %v86_v3 = vshrl.u32 %v85_v2, 7 }
  0x33   :  { %271 = vmatprep.subr.bf16.mxu0 %v861_v13  ;;  %312 = vmatprep.subr.bf16.mxu1 %v863_v14  ;;  %v892_v34 = vld [vmem:[#allocation5 + $0xc0] sm:$0xff]   ;;  %v896_v39 = vld [vmem:[#allocation5 + $0xc8] sm:$0xff]   ;;  %v899_v42 = vld [vmem:[#allocation5 + $0x50] sm:$0xff]   ;;  %s1002_s23 = smov [#allocation7]  }
  0x34   :  { %v893_v36 = vld [vmem:[#allocation5] sm:$0xff]   ;;  %v897_v40 = vld [vmem:[#allocation5 + $0x8] sm:$0xff]   ;;  %v900_v43 = vld [vmem:[#allocation5 + $0xd0] sm:$0xff]   ;;  %v87_v4 = vsub.s32 0, %v86_v3  ;;  %v95_v5 = vsub.s32 2, %v86_v3  ;;  %v91_v7 = vsub.s32 1, %v86_v3 }
  0x35   :  { %v894_v37 = vld [vmem:[#allocation5 + $0x80] sm:$0xff]   ;;  %v898_v41 = vld [vmem:[#allocation5 + $0x88] sm:$0xff]   ;;  %v901_v44 = vld [vmem:[#allocation5 + $0x10] sm:$0xff]   ;;  %v99_v8 = vsub.s32 3, %v86_v3  ;;  %s716_s24 = sshll.u32 %s1002_s23, 4  ;;  %s717_s24 = int_to_ptr.vmem [resolvable:$true] %s716_s24 }
  0x36   :  { %272 = vmatpush1.bf16.msra.mxu0 %v865_v15  ;;  %313 = vmatpush1.bf16.msra.mxu1 %v866_v16  ;;  %v902_v45 = vld [vmem:[#allocation5 + $0x90] sm:$0xff]   ;;  %v903_v46 = vld [vmem:[#allocation5 + $0x58] sm:$0xff]   ;;  %v907_v50 = vld [vmem:[#allocation5 + $0x60] sm:$0xff]   ;;  %s967_s25 = scalar_lea.vmem %s717_s24, 128  ;;  %p972_p3 = scmp.lt.s32.totalorder %s717_s24, %s717_s24 }
  0x37   :  { %273 = vmatprep.subr.bf16.mxu0 %v867_v17  ;;  %314 = vmatprep.subr.bf16.mxu1 %v869_v18  ;;  %v904_v47 = vld [vmem:[#allocation5 + $0xd8] sm:$0xff]   ;;  %v908_v51 = vld [vmem:[#allocation5 + $0xe0] sm:$0xff]   ;;  %v911_v54 = vld [vmem:[#allocation5 + $0x68] sm:$0xff]   ;;  %p968_p2 = scmp.ne.s32.totalorder %s717_s24, %s967_s25  ;;  %p973_p4 = scmp.lt.s32.totalorder %s967_s25, %s967_s25 }
  0x38   :  { %v905_v48 = vld [vmem:[#allocation5 + $0x18] sm:$0xff]   ;;  %v909_v52 = vld [vmem:[#allocation5 + $0x20] sm:$0xff]   ;;  %v912_v55 = vld [vmem:[#allocation5 + $0xe8] sm:$0xff]  }
  0x39   :  { %v906_v49 = vld [vmem:[#allocation5 + $0x98] sm:$0xff]   ;;  %v910_v53 = vld [vmem:[#allocation5 + $0xa0] sm:$0xff]   ;;  %v913_v56 = vld [vmem:[#allocation5 + $0x28] sm:$0xff]   ;;  %p974_p5 = por %p973_p4, %p972_p3 }
  0x3a   :  { %274 = vmatpush1.bf16.msra.mxu0 %v871_v19  ;;  %315 = vmatpush1.bf16.msra.mxu1 %v872_v20  ;;  %v914_v57 = vld [vmem:[#allocation5 + $0xa8] sm:$0xff]   ;;  %v915_v58 = vld [vmem:[#allocation5 + $0x70] sm:$0xff]   ;;  %v919_v62 = vld [vmem:[#allocation5 + $0x78] sm:$0xff]  }
  0x3b   :  { %275 = vmatprep.subr.bf16.mxu0 %v873_v21  ;;  %316 = vmatprep.subr.bf16.mxu1 %v875_v22  ;;  %v916_v59 = vld [vmem:[#allocation5 + $0xf0] sm:$0xff]   ;;  %v920_v63 = vld [vmem:[#allocation5 + $0xf8] sm:$0xff]   ;;  %p975_p6 = pnand %p974_p5, %p968_p2 }
  0x3c   :  { %v917_v60 = vld [vmem:[#allocation5 + $0x30] sm:$0xff]   ;;  %v921_v0 = vld [vmem:[#allocation5 + $0x38] sm:$0xff]  }
  0x3d   :  { %v918_v61 = vld [vmem:[#allocation5 + $0xb0] sm:$0xff]   ;;  %v922_v1 = vld [vmem:[#allocation5 + $0xb8] sm:$0xff]  }
  0x3e   :  { %276 = vmatpush1.bf16.msra.mxu0 %v877_v23  ;;  %317 = vmatpush1.bf16.msra.mxu1 %v878_v24  ;;  %v83_v6 = vld [vmem:[%s1080_s2] sm:$0xf] }
  0x3f   :  { %277 = vmatprep.subr.bf16.mxu0 %v879_v25  ;;  %318 = vmatprep.subr.bf16.mxu1 %v881_v26  ;;  %v88_v9 = vrot.slane %v83_v6, %v87_v4  ;;  %v96_v10 = vrot.slane %v83_v6, %v95_v5  ;;  %v92_v11 = vrot.slane %v83_v6, %v91_v7 }
  0x40   :  { %v100_v12 = vrot.slane %v83_v6, %v99_v8 }
  0x42   :  { %278 = vmatpush1.bf16.msra.mxu0 %v883_v27  ;;  %319 = vmatpush1.bf16.msra.mxu1 %v884_v28 }
  0x43   :  { %279 = vmatprep.subr.bf16.mxu0 %v885_v29  ;;  %320 = vmatprep.subr.bf16.mxu1 %v887_v30 }
  0x46   :  { %280 = vmatpush1.bf16.msra.mxu0 %v889_v31  ;;  %321 = vmatpush1.bf16.msra.mxu1 %v890_v32 }
  0x47   :  { %791 = vmatprep.subr.bf16.mxu0 %v891_v33  ;;  %813 = vmatprep.subr.bf16.mxu1 %v892_v34 }
  0x49   :  { %298 = vmatmul.mubr.bf16.vlgmr.msra.gmra.mrb[0].mxu0 %v50_v35  ;;  %339 = vmatmul.mubr.bf16.vlgmr.msra.gmra.mrb[0].mxu1 %v50_v35 }
  0x4a   :  { %792 = vmatpush3.bf16.msra.mxu0 %v893_v36  ;;  %814 = vmatpush3.bf16.msra.mxu1 %v894_v37 }
  0x4b   :  { %793 = vmatprep.subr.bf16.mxu0 %v895_v38  ;;  %815 = vmatprep.subr.bf16.mxu1 %v896_v39  ;;  %v758_v39 = vld [vmem:[%s1082_s4] ss:$0 sm:$0xff] }
  0x4e   :  { %794 = vmatpush3.bf16.msra.mxu0 %v897_v40  ;;  %816 = vmatpush3.bf16.msra.mxu1 %v898_v41 }
  0x4f   :  { %795 = vmatprep.subr.bf16.mxu0 %v899_v42  ;;  %817 = vmatprep.subr.bf16.mxu1 %v900_v43 }
  0x52   :  { %796 = vmatpush3.bf16.msra.mxu0 %v901_v44  ;;  %818 = vmatpush3.bf16.msra.mxu1 %v902_v45 }
  0x53   :  { %797 = vmatprep.subr.bf16.mxu0 %v903_v46  ;;  %819 = vmatprep.subr.bf16.mxu1 %v904_v47 }
  0x56   :  { %798 = vmatpush3.bf16.msra.mxu0 %v905_v48  ;;  %820 = vmatpush3.bf16.msra.mxu1 %v906_v49 }
  0x57   :  { %799 = vmatprep.subr.bf16.mxu0 %v907_v50  ;;  %821 = vmatprep.subr.bf16.mxu1 %v908_v51 }
  0x5a   :  { %800 = vmatpush3.bf16.msra.mxu0 %v909_v52  ;;  %822 = vmatpush3.bf16.msra.mxu1 %v910_v53 }
  0x5b   :  { %801 = vmatprep.subr.bf16.mxu0 %v911_v54  ;;  %823 = vmatprep.subr.bf16.mxu1 %v912_v55 }
  0x5e   :  { %802 = vmatpush3.bf16.msra.mxu0 %v913_v56  ;;  %824 = vmatpush3.bf16.msra.mxu1 %v914_v57 }
  0x5f   :  { %803 = vmatprep.subr.bf16.mxu0 %v915_v58  ;;  %825 = vmatprep.subr.bf16.mxu1 %v916_v59 }
  0x62   :  { %804 = vmatpush3.bf16.msra.mxu0 %v917_v60  ;;  %826 = vmatpush3.bf16.msra.mxu1 %v918_v61 }
  0x63   :  { %805 = vmatprep.subr.bf16.mxu0 %v919_v62  ;;  %827 = vmatprep.subr.bf16.mxu1 %v920_v63 }
  0x66   :  { %806 = vmatpush3.bf16.msra.mxu0 %v921_v0  ;;  %828 = vmatpush3.bf16.msra.mxu1 %v922_v1 }
 0x11c   :  { %v299_v13 = vpop.f32.mrb[0].mxu0  ;;  %v340_v14 = vpop.f32.mrb[0].mxu1 }
 0x11d   :  { %v300_v15 = vadd.f32 %v299_v13, %v88_v9  ;;  %v341_v16 = vadd.f32 %v340_v14, %v96_v10  ;;  %v301_v17 = vpop.f32.mrb[1].mxu0  ;;  %v342_v18 = vpop.f32.mrb[1].mxu1 }
 0x11e   :  { %v302_v19 = vadd.f32 %v301_v17, %v92_v11  ;;  %v343_v20 = vadd.f32 %v342_v18, %v100_v12  ;;  %v303_v21 = vpop.f32.mrb[2].mxu0  ;;  %v344_v22 = vpop.f32.mrb[2].mxu1 }
 0x11f   :  { %vm347_vm0 = vcmp.gt.f32.partialorder %v300_v15, 0.0  ;;  %v351_v23 = vmul.f32 0.2, %v300_v15  ;;  %vm349_vm1 = vcmp.gt.f32.partialorder %v341_v16, 0.0  ;;  %v353_v24 = vmul.f32 0.2, %v341_v16 }
 0x120   :  { %vm348_vm2 = vcmp.gt.f32.partialorder %v302_v19, 0.0  ;;  %v352_v25 = vmul.f32 0.2, %v302_v19  ;;  %vm350_vm3 = vcmp.gt.f32.partialorder %v343_v20, 0.0  ;;  %v354_v26 = vmul.f32 0.2, %v343_v20 }
 0x121   :  { %v355_v27 = vsel %vm347_vm0, %v300_v15, %v351_v23  ;;  %v357_v28 = vsel %vm349_vm1, %v341_v16, %v353_v24  ;;  %v304_v29 = vpop.f32.mrb[3].mxu0  ;;  %v345_v30 = vpop.f32.mrb[3].mxu1 }
 0x122   :  { %v356_v31 = vsel %vm348_vm2, %v302_v19, %v352_v25  ;;  %v358_v32 = vsel %vm350_vm3, %v343_v20, %v354_v26  ;;  %v359_v35 = vpack.c.bf16 %v355_v27, %v355_v27  ;;  %v361_v36 = vpack.c.bf16 %v357_v28, %v357_v28 }
 0x123   :  { %v360_v33 = vpack.c.bf16 %v356_v31, %v356_v31  ;;  %v362_v34 = vpack.c.bf16 %v358_v32, %v358_v32 }
 0x125   :  { %658 = vmatprep.mubr.bf16.mxu0 %v360_v33  ;;  %698 = vmatprep.mubr.bf16.mxu1 %v362_v34 }
 0x126   :  { %659 = vmatmul.mubr.bf16.vlgmr.msra.gmra.mrb[4].mxu0 %v359_v35  ;;  %699 = vmatmul.mubr.bf16.vlgmr.msra.gmra.mrb[4].mxu1 %v361_v36 }
 0x1f9   :  { %v807_v37 = vpop.f32.mrb[4].mxu0  ;;  %v829_v38 = vpop.f32.mrb[4].mxu1 }
 0x1fa   :  { %v808_v40 = vpop.f32.mrb[5].mxu0  ;;  %v830_v41 = vpop.f32.mrb[5].mxu1 }
 0x1fb   :  { %v809_v42 = vadd.f32 %v808_v40, %v807_v37  ;;  %v831_v43 = vadd.f32 %v830_v41, %v829_v38  ;;  %v810_v44 = vpop.f32.mrb[6].mxu0  ;;  %v832_v45 = vpop.f32.mrb[6].mxu1 }
 0x1fc   :  { %v811_v46 = vpop.f32.mrb[7].mxu0  ;;  %v833_v47 = vpop.f32.mrb[7].mxu1 }
 0x1fd   :  { %v661_v48 = vadd.f32 %v809_v42, %v758_v39 }
 0x1ff   :  { %v701_v49 = vadd.f32 %v831_v43, %v661_v48 }
 0x201   :  { %v707_v50 = vmul.f32 0.2, %v701_v49  ;;  %vm706_vm4 = vcmp.gt.f32.partialorder %v701_v49, 0.0 }
 0x203   :  { %v708_v51 = vsel %vm706_vm4, %v701_v49, %v707_v50 }
 0x204   :  { %709 = vst [vmem:[#allocation7] sm:$0xff] %v708_v51 }
 0x205   :  { %978 = shalt.err (!%p975_p6)
}
 0x206   :  { %s979_s27 = scalar_lea.hbm %s1083_s5, 128 }
 0x207   :  { %p980_p7 = scmp.ne.s32.totalorder %s1083_s5, %s979_s27  ;;  %p983_p8 = scmp.lt.u32.totalorder %s979_s27, %s1083_s5 }
 0x209   :  { %p985_p9 = pnand %p983_p8, %p980_p7 }
 0x20b   :  { %988 = shalt.err (!%p985_p9)
}
 0x20c   :  { %719 = dma.vmem_to_hbm [thread:$0]  %s717_s24, 128, %s1083_s5, [#allocation4]  }
 0x20d   :  { %993 = dma.done.wait [#allocation4], 128  }
 0x20e   :  { %994 = vsyncadd [#allocation4], 4294967168 }
 0x20f   :  { %723 = vsyncpa [#allocation3], 1 }
 0x210   :  { %724 = vsyncpa [#allocation6], 1 }
 0x211   :  { %725 = vsyncpa [#allocation4], 1 }

</bundles_post_ra>
